<compile_context>
chip_gen: v7x
topology: tpu7x:2x2x1
jax: 0.10.0
libtpu: 0.0.40
codegen_flags: <defaults>
</compile_context>

<pallas_src>
import math

import jax
import jax.numpy as jnp
from jax.experimental import pallas as pl
from jax.experimental.pallas import tpu as pltpu


# ----------------------------- tiling helpers ------------------------------ #

_LANES = 128          # lane width: last dim of every block is a multiple of this
_MAX_TILE_N = 2048    # cap the lane tile so huge N never blows VMEM (v7x: 64 MiB)


def _plan_cols(n: int):
    """Return (n_padded, tile_n, grid) for an N-column lane-dense layout."""
    n_pad = ((n + _LANES - 1) // _LANES) * _LANES
    if n_pad <= _MAX_TILE_N:
        return n_pad, n_pad, 1                     # single block, no grid overhead
    tn = _MAX_TILE_N
    n_pad = ((n + tn - 1) // tn) * tn
    return n_pad, tn, n_pad // tn


def _pad_cols(x, n_pad):
    n = x.shape[-1]
    if n_pad == n:
        return x
    return jnp.pad(x, ((0, 0), (0, n_pad - n)))


# ----------------------------- Pallas kernels ------------------------------ #

def _sample_logprob_kernel(eps_ref, loc_ref, chol_ref, c_ref, xT_ref, lp_ref):
    # Fused reparameterized sampling + log_prob, all in (D, N) lane-dense layout.
    #   x^T = L @ eps + loc                 (samples, transposed)
    #   (x - loc) = L @ eps  =>  Linv @ (x - loc) = eps
    #   maha = sum(eps^2, axis=D)           (sublane reduce, no extra matmul)
    #   logp = -0.5 * maha + c,   c = -0.5*(log|Sigma| + D*log(2*pi))
    eps = eps_ref[...]                                        # (D, tn)
    L = chol_ref[...]                                         # (D, D) lower Cholesky
    loc = loc_ref[...]                                        # (D, 1)
    xT = jnp.dot(L, eps, preferred_element_type=jnp.float32) + loc
    xT_ref[...] = xT.astype(xT_ref.dtype)                     # lane-dense (D, tn) store
    maha = jnp.sum(eps * eps, axis=0, keepdims=True)          # (1, tn)
    lp_ref[...] = (-0.5) * maha + c_ref[0]                    # lane-dense (1, tn) store


def _log_prob_kernel(xT_ref, loc_ref, linv_ref, c_ref, lp_ref):
    # Generic log_prob for arbitrary x (transposed layout).
    #   y = Linv @ (x^T - loc);  maha = sum(y*y, axis=D);  logp = -0.5*maha + c
    d = xT_ref[...] - loc_ref[...]                            # (D, tn)
    y = jnp.dot(linv_ref[...], d, preferred_element_type=jnp.float32)
    maha = jnp.sum(y * y, axis=0, keepdims=True)              # (1, tn)
    lp_ref[...] = (-0.5) * maha + c_ref[0]


# ----------------------------- Pallas wrappers ------------------------------ #

def _pallas_sample_and_log_prob(eps_T, loc_col, chol, c):
    d, n = eps_T.shape
    n_pad, tn, g = _plan_cols(n)
    eps_T = _pad_cols(eps_T, n_pad)
    xT, lp = pl.pallas_call(
        _sample_logprob_kernel,
        out_shape=(
            jax.ShapeDtypeStruct((d, n_pad), jnp.float32),
            jax.ShapeDtypeStruct((1, n_pad), jnp.float32),
        ),
        grid=(g,),
        in_specs=[
            pl.BlockSpec((d, tn), lambda i: (0, i)),
            pl.BlockSpec((d, 1), lambda i: (0, 0)),
            pl.BlockSpec((d, d), lambda i: (0, 0)),
            pl.BlockSpec(memory_space=pltpu.MemorySpace.SMEM),
        ],
        out_specs=[
            pl.BlockSpec((d, tn), lambda i: (0, i)),
            pl.BlockSpec((1, tn), lambda i: (0, i)),
        ],
        compiler_params=pltpu.CompilerParams(dimension_semantics=("parallel",)),
    )(eps_T, loc_col, chol, c)
    # transpose plumbing stays in the wrapper (kernel stores stay lane-dense)
    return xT[:, :n].T, lp[0, :n]


def _pallas_log_prob(x, loc_col, linv, c):
    n, d = x.shape
    n_pad, tn, g = _plan_cols(n)
    xT = _pad_cols(x.T, n_pad)                                # (D, n_pad) lane-dense
    lp = pl.pallas_call(
        _log_prob_kernel,
        out_shape=jax.ShapeDtypeStruct((1, n_pad), jnp.float32),
        grid=(g,),
        in_specs=[
            pl.BlockSpec((d, tn), lambda i: (0, i)),
            pl.BlockSpec((d, 1), lambda i: (0, 0)),
            pl.BlockSpec((d, d), lambda i: (0, 0)),
            pl.BlockSpec(memory_space=pltpu.MemorySpace.SMEM),
        ],
        out_specs=pl.BlockSpec((1, tn), lambda i: (0, i)),
        compiler_params=pltpu.CompilerParams(dimension_semantics=("parallel",)),
    )(xT, loc_col, linv, c)
    return lp[0, :n]


# --------------------------- Distribution object ---------------------------- #

class PallasGaussian:
    """Gaussian whose sample / log_prob hot paths are fused Pallas TPU kernels."""

    def __init__(self, loc, cov):
        self.loc = jnp.asarray(loc, jnp.float32)                      # (D,)
        self.cov = jnp.asarray(cov, jnp.float32)                      # (D, D)
        d = self.loc.shape[0]
        self._dim = d
        # tiny static factorizations: plain-JAX glue, done once host-side
        self._chol = jnp.linalg.cholesky(self.cov)                    # (D, D) lower
        self._linv = jax.scipy.linalg.solve_triangular(               # L^-1, better
            self._chol, jnp.eye(d, dtype=jnp.float32), lower=True     # conditioned
        )                                                             # than inv(cov)
        logdet = 2.0 * jnp.sum(jnp.log(jnp.diagonal(self._chol)))
        self._c = jnp.reshape(
            -0.5 * (logdet + d * jnp.float32(math.log(2.0 * math.pi))), (1,)
        ).astype(jnp.float32)                                         # folded constant
        self._loc_col = self.loc.reshape(d, 1)                        # (D, 1)

    def sample_and_log_prob(self, key, n):
        # eps generated directly in the lane-dense (D, N) layout
        eps_T = jax.random.normal(key, (self._dim, n), dtype=jnp.float32)
        return _pallas_sample_and_log_prob(eps_T, self._loc_col, self._chol, self._c)

    def rsample(self, key, n):
        samples, _ = self.sample_and_log_prob(key, n)   # logp is ~free in the fused kernel
        return samples

    def sample(self, key, n):
        return self.rsample(key, n)

    def log_prob(self, x):
        x = jnp.asarray(x, jnp.float32)
        if x.ndim == 1:
            x = x.reshape(1, -1)
        return _pallas_log_prob(x, self._loc_col, self._linv, self._c)


class Initial:
    """JAX/Pallas port of the PyTorch `Initial` module."""

    def __init__(self, loc, scale):
        self.loc = jnp.asarray(loc, jnp.float32)
        self.scale = jnp.asarray(scale, jnp.float32)
        self.dim = self.loc.shape[0] if self.loc.ndim != 0 else 1

    def __call__(self):
        if self.dim == 1:
            # torch.distributions.Normal(loc, scale): scale is a std-dev ->
            # lift to a 1-D Gaussian with covariance scale**2.
            loc = self.loc.reshape(1)
            cov = (self.scale ** 2).reshape(1, 1)
        else:
            # MultivariateNormal(loc, scale): scale is the covariance matrix.
            loc = self.loc
            cov = self.scale
        return PallasGaussian(loc, cov)

    # alias matching nn.Module.forward
    forward = __call__


# ----------------------------------- main ----------------------------------- #

if __name__ == "__main__":
    key = jax.random.PRNGKey(0)
    k_loc, k_cov, k_eps = jax.random.split(key, 3)

    D = 8        # state dimension (multivariate branch of the module)
    N = 256      # number of particles sampled from the initial distribution

    # Deterministic parameters: loc (D,) and an SPD covariance (D, D).
    loc = jax.random.normal(k_loc, (D,), dtype=jnp.float32)
    A = jax.random.normal(k_cov, (D, D), dtype=jnp.float32)
    cov = A @ A.T + D * jnp.eye(D, dtype=jnp.float32)

    init_module = Initial(loc, cov)
    dist = init_module()                                  # == forward(): the distribution

    samples, logp = dist.sample_and_log_prob(k_eps, N)    # fused Pallas kernel
    logp_generic = dist.log_prob(samples)                 # standalone log_prob kernel
    jax.block_until_ready((samples, logp, logp_generic))

    # Reference checks (plain JAX), using the identical eps stream.
    eps_T = jax.random.normal(k_eps, (D, N), dtype=jnp.float32)
    L = jnp.linalg.cholesky(cov)
    samples_ref = (L @ eps_T).T + loc[None, :]
    logp_ref = jax.scipy.stats.multivariate_normal.logpdf(samples_ref, loc, cov)

    assert samples.shape == (N, D) and logp.shape == (N,) and logp_generic.shape == (N,)
    assert jnp.allclose(samples, samples_ref, atol=1e-4, rtol=1e-4)
    assert jnp.allclose(logp, logp_ref, atol=1e-3, rtol=1e-4)
    assert jnp.allclose(logp_generic, logp_ref, atol=1e-3, rtol=1e-4)

    print("KERNEL_OK")
</pallas_src>

<mosaic_0001>
module attributes {stable_mosaic.version = 11 : i64} {
  func.func @_sample_logprob_kernel(%arg0: i32, %arg1: memref<8x256xf32, #tpu.memory_space<vmem>>, %arg2: memref<8x1xf32, #tpu.memory_space<vmem>>, %arg3: memref<8x8xf32, #tpu.memory_space<vmem>>, %arg4: memref<1xf32, #tpu.memory_space<smem>>, %arg5: memref<8x256xf32, #tpu.memory_space<vmem>>, %arg6: memref<1x256xf32, #tpu.memory_space<vmem>>) attributes {dimension_semantics = [#tpu.dimension_semantics<parallel>], iteration_bounds = array<i64: 1>, scalar_prefetch = 0 : i64, scratch_operands = 0 : i64, tpu.core_type = #tpu.core_type<tc>, window_params = [{transform_indices = @transform_0, window_bounds = array<i64: 8, 256>}, {pipeline_mode = #tpu.pipeline_mode<synchronous>, transform_indices = @transform_1, window_bounds = array<i64: 8, 1>}, {pipeline_mode = #tpu.pipeline_mode<synchronous>, transform_indices = @transform_2, window_bounds = array<i64: 8, 8>}, {transform_indices = @transform_3, window_bounds = array<i64: 1>}, {transform_indices = @transform_4, window_bounds = array<i64: 8, 256>}, {transform_indices = @transform_5, window_bounds = array<i64: 1, 256>}]} {
    %c0 = arith.constant 0 : index
    %c0_0 = arith.constant 0 : index
    %0 = vector.load %arg1[%c0, %c0_0] : memref<8x256xf32, #tpu.memory_space<vmem>>, vector<8x256xf32>
    %c0_1 = arith.constant 0 : index
    %c0_2 = arith.constant 0 : index
    %1 = vector.load %arg3[%c0_1, %c0_2] : memref<8x8xf32, #tpu.memory_space<vmem>>, vector<8x8xf32>
    %c0_3 = arith.constant 0 : index
    %c0_4 = arith.constant 0 : index
    %2 = vector.load %arg2[%c0_3, %c0_4] : memref<8x1xf32, #tpu.memory_space<vmem>>, vector<8x1xf32>
    %cst = arith.constant dense<0.000000e+00> : vector<8x256xf32>
    %3 = tpu.matmul %1, %0, %cst {dimension_numbers = #tpu.dot_dimension_numbers<[1], [0], [0], [1], [0, 0, 1, 1], [], []>} : vector<8x8xf32>, vector<8x256xf32>, vector<8x256xf32> -> vector<8x256xf32>
    %4 = vector.broadcast %2 : vector<8x1xf32> to vector<8x256xf32>
    %5 = arith.addf %3, %4 : vector<8x256xf32>
    %c0_5 = arith.constant 0 : index
    %c0_6 = arith.constant 0 : index
    %6 = vector.load %arg5[%c0_5, %c0_6] : memref<8x256xf32, #tpu.memory_space<vmem>>, vector<8x256xf32>
    tpu.vector_store %arg5[%c0_5, %c0_6], %5 {strides = array<i32>} : memref<8x256xf32, #tpu.memory_space<vmem>>, vector<8x256xf32>,
    %7 = arith.mulf %0, %0 : vector<8x256xf32>
    %cst_7 = arith.constant dense<0.000000e+00> : vector<256xf32>
    %8 = vector.multi_reduction <add>, %7, %cst_7 [0] : vector<8x256xf32> to vector<256xf32>
    %9 = vector.shape_cast %8 : vector<256xf32> to vector<1x256xf32>
    %cst_8 = arith.constant -5.000000e-01 : f32
    %10 = vector.broadcast %cst_8 : f32 to vector<1x256xf32>
    %11 = arith.mulf %10, %9 : vector<1x256xf32>
    %c0_9 = arith.constant 0 : index
    %12 = memref.load %arg4[%c0_9] : memref<1xf32, #tpu.memory_space<smem>>
    %13 = vector.broadcast %12 : f32 to vector<1x256xf32>
    %14 = arith.addf %11, %13 : vector<1x256xf32>
    %c0_10 = arith.constant 0 : index
    %c0_11 = arith.constant 0 : index
    %15 = vector.load %arg6[%c0_10, %c0_11] : memref<1x256xf32, #tpu.memory_space<vmem>>, vector<1x256xf32>
    tpu.vector_store %arg6[%c0_10, %c0_11], %14 {strides = array<i32>} : memref<1x256xf32, #tpu.memory_space<vmem>>, vector<1x256xf32>,
    return
  }
  func.func @transform_0(%arg0: i32) -> (i32, i32) {
    %c0_i32 = arith.constant 0 : i32
    %c0_i32_0 = arith.constant 0 : i32
    return %c0_i32, %arg0 : i32, i32
  }
  func.func @transform_1(%arg0: i32) -> (i32, i32) {
    %c0_i32 = arith.constant 0 : i32
    %c0_i32_0 = arith.constant 0 : i32
    %c0_i32_1 = arith.constant 0 : i32
    return %c0_i32, %c0_i32_0 : i32, i32
  }
  func.func @transform_2(%arg0: i32) -> (i32, i32) {
    %c0_i32 = arith.constant 0 : i32
    %c0_i32_0 = arith.constant 0 : i32
    %c0_i32_1 = arith.constant 0 : i32
    return %c0_i32, %c0_i32_0 : i32, i32
  }
  func.func @transform_3(%arg0: i32) -> i32 {
    %c0_i32 = arith.constant 0 : i32
    %c0_i32_0 = arith.constant 0 : i32
    return %c0_i32 : i32
  }
  func.func @transform_4(%arg0: i32) -> (i32, i32) {
    %c0_i32 = arith.constant 0 : i32
    %c0_i32_0 = arith.constant 0 : i32
    return %c0_i32, %arg0 : i32, i32
  }
  func.func @transform_5(%arg0: i32) -> (i32, i32) {
    %c0_i32 = arith.constant 0 : i32
    %c0_i32_0 = arith.constant 0 : i32
    return %c0_i32, %arg0 : i32, i32
  }
}

</mosaic_0001>

<bundles_post_ra>
// kernel: tpu_custom_call.1
= control target key start
LH: loop header
LB: loop body
LE: loop exit
PB: predicated region body
PF: predicated region fallthrough
CT: control target
= control target key end

     0   :  { %12 = vsyncpa [#allocation4], 0  ;;  %s353_s0 = inlined_call_operand.hbm [shape: f32[8,256], index: 0, kind: input, shape index: {}]   ;;  %s354_s1 = inlined_call_operand.vmem [shape: f32[8,1], index: 1, kind: input, shape index: {}]   ;;  %s355_s2 = inlined_call_operand.vmem [shape: f32[8,8], index: 2, kind: input, shape index: {}]   ;;  %s356_s3 = inlined_call_operand.<no memory space> [shape: f32[1], index: 3, kind: input, shape index: {}]   ;;  %s357_s4 = inlined_call_operand.hbm [shape: f32[8,256], index: 4, kind: output, shape index: {0}]   ;;  %s358_s5 = inlined_call_operand.hbm [shape: f32[1,256], index: 5, kind: output, shape index: {1}]  }
   0x1   :  { %13 = vsyncpa [#allocation5], 0 }
   0x2   :  { %14 = vsyncpa [#allocation8], 0  ;;  %s272_s18 = smov [#allocation3]   ;;  %s200_s22 = scalar_lea.hbm %s353_s0, 256 }
   0x3   :  { %s21_s19 = sshll.u32 %s272_s18, 4  ;;  %p201_p0 = scmp.ne.s32.totalorder %s353_s0, %s200_s22  ;;  %s22_s19 = int_to_ptr.vmem [resolvable:$true] %s21_s19 }
   0x4   :  { %p204_p1 = scmp.lt.u32.totalorder %s200_s22, %s353_s0 }
   0x6   :  { %p206_p2 = pnand %p204_p1, %p201_p0 }
   0x8   :  { %209 = shalt.err (!%p206_p2)
}
   0x9   :  { %s210_s27 = scalar_lea.vmem %s22_s19, 256  ;;  %p215_p4 = scmp.lt.s32.totalorder %s22_s19, %s22_s19 }
   0xa   :  { %p211_p3 = scmp.ne.s32.totalorder %s22_s19, %s210_s27  ;;  %p216_p5 = scmp.lt.s32.totalorder %s210_s27, %s210_s27 }
   0xc   :  { %p217_p6 = por %p216_p5, %p215_p4 }
   0xe   :  { %p218_p7 = pnand %p217_p6, %p211_p3 }
  0x10   :  { %221 = shalt.err (!%p218_p7)
}
  0x11   :  { %24 = dma.hbm_to_vmem [thread:$0]  %s353_s0, 256, %s22_s19, [#allocation4]  }
  0x12   :  { %266 = dma.done.wait [#allocation4], 256  }
  0x13   :  { %267 = vsyncadd [#allocation4], 4294967040  ;;  %v273_v0 = vmov 0.0   ;;  %v274_v1 = vmov 0   ;;  %v35_v2 = vld [vmem:[#allocation3 + $0x8] sm:$0xff]  ;;  %v34_v3 = vld [vmem:[#allocation3] sm:$0xff]  ;;  %v137_v22 = vstv %s356_s3  ;;  %v146_v27 = vlaneseq }
  0x14   :  { %111 = vmatprep.mubr.f32.mxu0 %v273_v0  ;;  %199 = vset.pattern.permute.xlu0 %v274_v1  ;;  %v36_v4 = vld [vmem:[%s355_s2] sm:$0xff]  ;;  %vm43_vm0 = vcmask 64512   ;;  %v121_v6 = vmul.f32 %v35_v2, %v35_v2  ;;  %v120_v7 = vmul.f32 %v34_v3, %v34_v3  ;;  %v275_v25 = vmov 1966171168   ;;  %s276_s2 = smov [#allocation7]  }
  0x15   :  { %47 = vmatprep.subr.mxu0 %v35_v2  ;;  %v37_v5 = vld [vmem:[%s354_s1] sm:$0xff]  ;;  %v144_v26 = vunpack.c.l.s4 %v275_v25  ;;  %v147_v29 = vshrl.u32 %v146_v27, 7  ;;  %vm160_vm1 = vcmp.lt.s32.totalorder %v146_v27, 256  ;;  %s179_s9 = sshll.u32 %s276_s2, 4  ;;  %s180_s9 = int_to_ptr.vmem [resolvable:$true] %s179_s9 }
  0x16   :  { %48 = vmatpush1.msra.mxu0 %v34_v3  ;;  %40 = vperm.xlu0 %199, %v37_v5   ;;  %v128_v8 = vrot.slane %v121_v6, 4  ;;  %v122_v9 = vrot.slane %v120_v7, 4  ;;  %s222_s10 = scalar_lea.vmem %s180_s9, 32  ;;  %p227_p9 = scmp.lt.s32.totalorder %s180_s9, %s180_s9 }
  0x17   :  { %192 = vmatmul.mubr.msk.f32.vlgmr.msra.gmra.mrb[0].mxu0 %vm43_vm0, %v36_v4  ;;  %v145_v28 = vunpack.c.0.s8 %v144_v26  ;;  %p223_p8 = scmp.ne.s32.totalorder %s180_s9, %s222_s10  ;;  %p228_p10 = scmp.lt.s32.totalorder %s222_s10, %s222_s10 }
  0x18   :  { %v129_v10 = vadd.f32 %v128_v8, %v121_v6  ;;  %v123_v11 = vadd.f32 %v122_v9, %v120_v7 }
  0x19   :  { %v148_v31 = vsub.s32 %v145_v28, %v147_v29  ;;  %p229_p11 = por %p228_p10, %p227_p9 }
  0x1a   :  { %v130_v12 = vrot.slane %v129_v10, 2  ;;  %v124_v13 = vrot.slane %v123_v11, 2 }
  0x1b   :  { %p230_p12 = pnand %p229_p11, %p223_p8 }
  0x1c   :  { %v131_v14 = vadd.f32 %v130_v12, %v129_v10  ;;  %v125_v15 = vadd.f32 %v124_v13, %v123_v11 }
  0x1e   :  { %v132_v16 = vrot.slane %v131_v14, 1  ;;  %v126_v17 = vrot.slane %v125_v15, 1 }
  0x20   :  { %v133_v18 = vadd.f32 %v132_v16, %v131_v14  ;;  %v127_v19 = vadd.f32 %v126_v17, %v125_v15 }
  0x22   :  { %v135_v20 = vmul.f32 -0.5, %v133_v18  ;;  %v134_v21 = vmul.f32 -0.5, %v127_v19 }
  0x24   :  { %v139_v23 = vadd.f32 %v137_v22, %v135_v20  ;;  %v138_v24 = vadd.f32 %v137_v22, %v134_v21 }
  0x26   :  { %v142_v30 = vcombine.low %v138_v24, %v139_v23 }
  0x28   :  { %v149_v32 = vrot.slane %v142_v30, %v148_v31 }
  0x2a   :  { %v156_v33 = vrot.slane %v149_v32, %v148_v31 }
  0x2c   :  { %162 = vst.msk [vmem:[#allocation7] sm:$0x3] %vm160_vm1, %v156_v33 }
  0x2d   :  { %233 = shalt.err (!%p230_p12)
}
  0x2e   :  { %s234_s12 = scalar_lea.hbm %s358_s5, 32 }
  0x2f   :  { %p235_p13 = scmp.ne.s32.totalorder %s358_s5, %s234_s12  ;;  %p238_p0 = scmp.lt.u32.totalorder %s234_s12, %s358_s5 }
  0x31   :  { %p240_p1 = pnand %p238_p0, %p235_p13 }
  0x33   :  { %243 = shalt.err (!%p240_p1)
}
  0x34   :  { %182 = dma.vmem_to_hbm [thread:$0]  %s180_s9, 32, %s358_s5, [#allocation8]  }
  0x35   :  { %s277_s19 = smov [#allocation6]  }
  0x36   :  { %s169_s20 = sshll.u32 %s277_s19, 4  ;;  %s170_s20 = int_to_ptr.vmem [resolvable:$true] %s169_s20 }
  0x37   :  { %s244_s21 = scalar_lea.vmem %s170_s20, 256  ;;  %p249_p3 = scmp.lt.s32.totalorder %s170_s20, %s170_s20 }
  0x38   :  { %p245_p2 = scmp.ne.s32.totalorder %s170_s20, %s244_s21  ;;  %p250_p4 = scmp.lt.s32.totalorder %s244_s21, %s244_s21 }
  0x3a   :  { %p251_p5 = por %p250_p4, %p249_p3 }
  0x3c   :  { %p252_p6 = pnand %p251_p5, %p245_p2 }
  0x95   :  { %v41_v34 = vpop.permute.xlu0 %40 }
  0xea   :  { %v113_v35 = vpop.f32.mrb[0].mxu0 }
  0xeb   :  { %v114_v36 = vadd.f32 %v113_v35, %v41_v34  ;;  %v115_v37 = vpop.f32.mrb[1].mxu0 }
  0xec   :  { %v116_v38 = vadd.f32 %v115_v37, %v41_v34 }
  0xed   :  { %118 = vst [vmem:[#allocation6] sm:$0xff] %v114_v36 }
  0xee   :  { %119 = vst [vmem:[#allocation6 + $0x8] sm:$0xff] %v116_v38 }
  0xef   :  { %255 = shalt.err (!%p252_p6)
}
  0xf0   :  { %s256_s5 = scalar_lea.hbm %s357_s4, 256 }
  0xf1   :  { %p257_p7 = scmp.ne.s32.totalorder %s357_s4, %s256_s5  ;;  %p260_p8 = scmp.lt.u32.totalorder %s256_s5, %s357_s4 }
  0xf3   :  { %p262_p9 = pnand %p260_p8, %p257_p7 }
  0xf5   :  { %265 = shalt.err (!%p262_p9)
}
  0xf6   :  { %172 = dma.vmem_to_hbm [thread:$0]  %s170_s20, 256, %s357_s4, [#allocation5]  }
  0xf7   :  { %268 = dma.done.wait [#allocation5], 256  }
  0xf8   :  { %269 = vsyncadd [#allocation5], 4294967040 }
  0xf9   :  { %270 = dma.done.wait [#allocation8], 32  }
  0xfa   :  { %271 = vsyncadd [#allocation8], 4294967264 }
  0xfb   :  { %189 = vsyncpa [#allocation4], 1 }
  0xfc   :  { %190 = vsyncpa [#allocation5], 1 }
  0xfd   :  { %191 = vsyncpa [#allocation8], 1 }

</bundles_post_ra>
